<compile_context>
chip_gen: v5e
topology: v5e:2x2
jax: 0.10.0
libtpu: 0.0.40
codegen_flags: <defaults>
</compile_context>

<pallas_src>
import functools

import jax
import jax.numpy as jnp
from jax.experimental import pallas as pl
from jax.experimental.pallas import tpu as pltpu


def _channel_ln_kernel(x_ref, g_ref, o_ref, *, eps, inv_c):
    """One pass over the tile; the reduction is over axis=1 (channels)."""
    x = x_ref[...].astype(jnp.float32)
    mean = jnp.sum(x, axis=1, keepdims=True) * inv_c
    ex2 = jnp.sum(x * x, axis=1, keepdims=True) * inv_c
    var = ex2 - mean * mean                      # population variance (unbiased=False)
    a = jax.lax.rsqrt(var + eps)                 # EUP (free slot)
    b = -mean * a
    o_ref[...] = ((x * a + b) * g_ref[...]).astype(o_ref.dtype)


def _vmem_capacity_bytes():
    try:
        cap = getattr(pltpu.get_tpu_info(), "vmem_capacity_bytes", None)
        if cap:
            return int(cap)
    except Exception:
        pass
    return 64 << 20   # conservative (v7x-sized) fallback


_TARGET_STEP_IN_BYTES = 2 << 20   # >= ~2 MiB input (~4 MiB in+out HBM) per grid step


def channel_layernorm(x_nchw, g):
    """Channel-wise LayerNorm matching the PyTorch module's forward."""
    B, C, H, W = x_nchw.shape
    S = H * W
    dtype = x_nchw.dtype
    itemsize = jnp.dtype(dtype).itemsize
    eps = 1e-05 if dtype == jnp.float32 else 1e-03
    inv_c = 1.0 / C

    sublane_pack = 8 * (4 // itemsize)            # 8 f32 / 16 bf16 / 32 int8

    vmem_cap = _vmem_capacity_bytes()
    vmem_limit = int(min((vmem_cap * 3) // 4, 64 << 20))   # ~48 MiB v7x, 64 MiB v5e/v6e

    kernel = functools.partial(_channel_ln_kernel, eps=eps, inv_c=inv_c)

    use_4d = (C < sublane_pack) and (S % 128 == 0)

    if use_4d:
        # ---- Layout A: (B, C, S//128, 128); full-density vregs, C as a major dim.
        S128 = S // 128
        g_resident = 2 * C * 8 * 128 * 4          # (1, C, 1, 1) f32, double-buffered
        budget = max(vmem_limit // 2 - g_resident, 1 << 20)

        def vmem_use(tb, bs):                     # bs = spatial block in 128-lane chunks
            bs_pad = -(-bs // 8) * 8              # sublane padding
            io = tb * C * bs_pad * 128 * itemsize
            tmp = 2 * tb * C * bs_pad * 128 * 4   # in-kernel f32 temporaries
            return 2 * 2 * io + tmp               # double-buffered in + out, + temps

        if S128 <= 8 or vmem_use(1, S128) <= budget:
            bs = S128                             # whole spatial axis per step
        else:
            granules = max(1, budget // vmem_use(1, 8))
            bs = min(S128, granules * 8)          # multiple of 8 chunks; tail masked
        # TODO(synk): if even one 8x128 granule over-budgets (C in the tens of
        # thousands), tile C with a reduction grid axis + accumulator.

        tb = 1
        if bs >= S128 and B > 1:
            step_in = C * S128 * 128 * itemsize
            if step_in < _TARGET_STEP_IN_BYTES:
                want = -(-_TARGET_STEP_IN_BYTES // step_in)
                fit = max(1, budget // vmem_use(1, bs))
                tb = int(max(1, min(want, fit, (B + 1) // 2)))   # keep >= 2 grid steps

        x4 = x_nchw.reshape(B, C, S128, 128)
        g4 = g.reshape(1, C, 1, 1).astype(jnp.float32)
        grid = (pl.cdiv(B, tb), pl.cdiv(S128, bs))

        out = pl.pallas_call(
            kernel,
            out_shape=jax.ShapeDtypeStruct((B, C, S128, 128), dtype),
            grid_spec=pltpu.PrefetchScalarGridSpec(
                num_scalar_prefetch=0,
                grid=grid,
                in_specs=[
                    pl.BlockSpec((tb, C, bs, 128), lambda b, s: (b, 0, s, 0)),
                    pl.BlockSpec((1, C, 1, 1), lambda b, s: (0, 0, 0, 0)),
                ],
                out_specs=pl.BlockSpec((tb, C, bs, 128), lambda b, s: (b, 0, s, 0)),
            ),
            compiler_params=pltpu.CompilerParams(
                dimension_semantics=("parallel", "parallel"),
                vmem_limit_bytes=vmem_limit,
            ),
        )(x4, g4)
        return out.reshape(B, C, H, W)

    # ---- Layout B: (B, C, S); C on sublanes, spatial on lanes.
    c_pad = -(-C // sublane_pack) * sublane_pack
    c_pad_f32 = -(-C // 8) * 8
    g_resident = 2 * c_pad_f32 * 128 * 4          # (1, C, 1) f32, double-buffered
    budget = max(vmem_limit // 2 - g_resident, 1 << 20)

    def vmem_use(tb, ts):
        io = tb * c_pad * ts * itemsize           # sublane-padded in (or out) tile
        tmp = 2 * tb * c_pad_f32 * ts * 4         # in-kernel f32 temporaries
        return 2 * 2 * io + tmp

    if S < 128:
        ts = S                                    # lane block may equal a short full axis
    else:
        granules = max(1, budget // vmem_use(1, 128))
        ts = min((S // 128) * 128, granules * 128)   # multiple of 128; tail masked
    # TODO(synk): if even a 128-lane granule over-budgets (enormous C), tile C
    # with a reduction grid axis + accumulator.

    tb = 1
    if pl.cdiv(S, ts) == 1 and B > 1:
        step_in = C * S * itemsize
        if step_in < _TARGET_STEP_IN_BYTES:
            want = -(-_TARGET_STEP_IN_BYTES // step_in)
            fit = max(1, budget // vmem_use(1, ts))
            tb = int(max(1, min(want, fit, (B + 1) // 2)))       # keep >= 2 grid steps

    x3 = x_nchw.reshape(B, C, S)
    g3 = g.reshape(1, C, 1).astype(jnp.float32)
    grid = (pl.cdiv(B, tb), pl.cdiv(S, ts))

    out = pl.pallas_call(
        kernel,
        out_shape=jax.ShapeDtypeStruct((B, C, S), dtype),
        grid_spec=pltpu.PrefetchScalarGridSpec(
            num_scalar_prefetch=0,
            grid=grid,
            in_specs=[
                pl.BlockSpec((tb, C, ts), lambda b, s: (b, 0, s)),
                pl.BlockSpec((1, C, 1), lambda b, s: (0, 0, 0)),
            ],
            out_specs=pl.BlockSpec((tb, C, ts), lambda b, s: (b, 0, s)),
        ),
        compiler_params=pltpu.CompilerParams(
            dimension_semantics=("parallel", "parallel"),
            vmem_limit_bytes=vmem_limit,
        ),
    )(x3, g3)
    return out.reshape(B, C, H, W)


def _reference(x, g, eps):
    mean = jnp.mean(x, axis=1, keepdims=True)
    var = jnp.mean((x - mean) ** 2, axis=1, keepdims=True)
    return (x - mean) * jax.lax.rsqrt(var + eps) * g


if __name__ == "__main__":
    key = jax.random.PRNGKey(0)
    k1, k2 = jax.random.split(key)

    # Primary test (matches the module's typical small shape): exercises the
    # small-C full-density 4-D layout.
    B, C, H, W = 2, 4, 16, 16
    x = jax.random.normal(k1, (B, C, H, W), dtype=jnp.float32)
    g = jnp.ones((1, C, 1, 1), dtype=jnp.float32)   # nn.Parameter(torch.ones(1, dim, 1, 1))
    out = jax.block_until_ready(channel_layernorm(x, g))
    ref = _reference(x, g, 1e-05)
    assert out.shape == (B, C, H, W)
    assert jnp.max(jnp.abs(out - ref)) < 1e-4

    # Secondary test: C >= sublane pack and ragged spatial size (exercises the
    # 3-D layout with a 128-multiple lane tile and a masked tail block).
    B2, C2, H2, W2 = 2, 8, 12, 12
    x2 = jax.random.normal(k2, (B2, C2, H2, W2), dtype=jnp.float32)
    g2 = jnp.ones((1, C2, 1, 1), dtype=jnp.float32)
    out2 = jax.block_until_ready(channel_layernorm(x2, g2))
    ref2 = _reference(x2, g2, 1e-05)
    assert out2.shape == (B2, C2, H2, W2)
    assert jnp.max(jnp.abs(out2 - ref2)) < 1e-4

    print("KERNEL_OK")
</pallas_src>

<mosaic_0001>
module attributes {stable_mosaic.version = 11 : i64} {
  func.func @_channel_ln_kernel(%arg0: i32, %arg1: i32, %arg2: memref<1x4x2x128xf32, #tpu.memory_space<vmem>>, %arg3: memref<1x4x1x1xf32, #tpu.memory_space<vmem>>, %arg4: memref<1x4x2x128xf32, #tpu.memory_space<vmem>>) attributes {dimension_semantics = [#tpu.dimension_semantics<parallel>, #tpu.dimension_semantics<parallel>], iteration_bounds = array<i64: 2, 1>, scalar_prefetch = 0 : i64, scratch_operands = 0 : i64, tpu.core_type = #tpu.core_type<tc>, window_params = [{transform_indices = @transform_0, window_bounds = array<i64: 1, 4, 2, 128>}, {pipeline_mode = #tpu.pipeline_mode<synchronous>, transform_indices = @transform_1, window_bounds = array<i64: 1, 4, 1, 1>}, {transform_indices = @transform_2, window_bounds = array<i64: 1, 4, 2, 128>}]} {
    %c0 = arith.constant 0 : index
    %c0_0 = arith.constant 0 : index
    %c0_1 = arith.constant 0 : index
    %c0_2 = arith.constant 0 : index
    %0 = vector.load %arg2[%c0, %c0_0, %c0_1, %c0_2] : memref<1x4x2x128xf32, #tpu.memory_space<vmem>>, vector<1x4x2x128xf32>
    %cst = arith.constant dense<0.000000e+00> : vector<1x2x128xf32>
    %1 = vector.multi_reduction <add>, %0, %cst [1] : vector<1x4x2x128xf32> to vector<1x2x128xf32>
    %2 = vector.shape_cast %1 : vector<1x2x128xf32> to vector<1x1x2x128xf32>
    %cst_3 = arith.constant 2.500000e-01 : f32
    %3 = vector.broadcast %cst_3 : f32 to vector<1x1x2x128xf32>
    %4 = arith.mulf %2, %3 : vector<1x1x2x128xf32>
    %5 = arith.mulf %0, %0 : vector<1x4x2x128xf32>
    %cst_4 = arith.constant dense<0.000000e+00> : vector<1x2x128xf32>
    %6 = vector.multi_reduction <add>, %5, %cst_4 [1] : vector<1x4x2x128xf32> to vector<1x2x128xf32>
    %7 = vector.shape_cast %6 : vector<1x2x128xf32> to vector<1x1x2x128xf32>
    %cst_5 = arith.constant 2.500000e-01 : f32
    %8 = vector.broadcast %cst_5 : f32 to vector<1x1x2x128xf32>
    %9 = arith.mulf %7, %8 : vector<1x1x2x128xf32>
    %10 = arith.mulf %4, %4 : vector<1x1x2x128xf32>
    %11 = arith.subf %9, %10 : vector<1x1x2x128xf32>
    %cst_6 = arith.constant 9.99999974E-6 : f32
    %12 = vector.broadcast %cst_6 : f32 to vector<1x1x2x128xf32>
    %13 = arith.addf %11, %12 : vector<1x1x2x128xf32>
    %14 = math.rsqrt %13 : vector<1x1x2x128xf32>
    %cst_7 = arith.constant 0.000000e+00 : f32
    %15 = vector.broadcast %cst_7 : f32 to vector<1x1x2x128xf32>
    %16 = arith.subf %15, %4 : vector<1x1x2x128xf32>
    %17 = arith.mulf %16, %14 : vector<1x1x2x128xf32>
    %18 = vector.broadcast %14 : vector<1x1x2x128xf32> to vector<1x4x2x128xf32>
    %19 = arith.mulf %0, %18 : vector<1x4x2x128xf32>
    %20 = vector.broadcast %17 : vector<1x1x2x128xf32> to vector<1x4x2x128xf32>
    %21 = arith.addf %19, %20 : vector<1x4x2x128xf32>
    %c0_8 = arith.constant 0 : index
    %c0_9 = arith.constant 0 : index
    %c0_10 = arith.constant 0 : index
    %c0_11 = arith.constant 0 : index
    %22 = vector.load %arg3[%c0_8, %c0_9, %c0_10, %c0_11] : memref<1x4x1x1xf32, #tpu.memory_space<vmem>>, vector<1x4x1x1xf32>
    %23 = vector.broadcast %22 : vector<1x4x1x1xf32> to vector<1x4x2x128xf32>
    %24 = arith.mulf %21, %23 : vector<1x4x2x128xf32>
    %c0_12 = arith.constant 0 : index
    %c0_13 = arith.constant 0 : index
    %c0_14 = arith.constant 0 : index
    %c0_15 = arith.constant 0 : index
    %25 = vector.load %arg4[%c0_12, %c0_13, %c0_14, %c0_15] : memref<1x4x2x128xf32, #tpu.memory_space<vmem>>, vector<1x4x2x128xf32>
    tpu.vector_store %arg4[%c0_12, %c0_13, %c0_14, %c0_15], %24 {strides = array<i32>} : memref<1x4x2x128xf32, #tpu.memory_space<vmem>>, vector<1x4x2x128xf32>,
    return
  }
  func.func @transform_0(%arg0: i32, %arg1: i32) -> (i32, i32, i32, i32) {
    %c0_i32 = arith.constant 0 : i32
    %c0_i32_0 = arith.constant 0 : i32
    %c0_i32_1 = arith.constant 0 : i32
    return %arg0, %c0_i32, %arg1, %c0_i32_0 : i32, i32, i32, i32
  }
  func.func @transform_1(%arg0: i32, %arg1: i32) -> (i32, i32, i32, i32) {
    %c0_i32 = arith.constant 0 : i32
    %c0_i32_0 = arith.constant 0 : i32
    %c0_i32_1 = arith.constant 0 : i32
    %c0_i32_2 = arith.constant 0 : i32
    %c0_i32_3 = arith.constant 0 : i32
    return %c0_i32, %c0_i32_0, %c0_i32_1, %c0_i32_2 : i32, i32, i32, i32
  }
  func.func @transform_2(%arg0: i32, %arg1: i32) -> (i32, i32, i32, i32) {
    %c0_i32 = arith.constant 0 : i32
    %c0_i32_0 = arith.constant 0 : i32
    %c0_i32_1 = arith.constant 0 : i32
    return %arg0, %c0_i32, %arg1, %c0_i32_0 : i32, i32, i32, i32
  }
}

</mosaic_0001>

<bundles_post_ra>
// kernel: tpu_custom_call.1
= control target key start
LH: loop header
LB: loop body
LE: loop exit
PB: predicated region body
PF: predicated region fallthrough
CT: control target
= control target key end

     0   :  { %7 = vsyncpa [#allocation3], 0  ;;  %s737_s0 = inlined_call_operand.hbm [shape: f32[2,4,2,128], index: 0, kind: input, shape index: {}]   ;;  %s738_s1 = inlined_call_operand.vmem [shape: f32[1,4,1,1], index: 1, kind: input, shape index: {}]   ;;  %s739_s2 = inlined_call_operand.hbm [shape: f32[2,4,2,128], index: 2, kind: output, shape index: {}]  }
   0x1   :  { %9 = vsyncpa [#allocation3 + $0x1], 0 }
   0x2   :  { %10 = vsyncpa [#allocation4], 0 }
   0x3   :  { %12 = vsyncpa [#allocation4 + $0x1], 0  ;;  %s593_s9 = smov 0   ;;  %s595_s10 = smov 0  }
   0x4   :  { %s597_s11 = smov 0   ;;  %s599_s12 = smov 0  }
   0x5   :  { %s601_s13 = smov 0   ;;  %s603_s14 = smov 0  }
   0x6 LB: > { %s367_s15 = sadd.s32 4294967295, %s571_s14   ;;  %s368_s16 = sadd.s32 4294967294, %s571_s14   ;;  %s571_s14 = sphi %s603_s14, %s18_s14   ;;  %s567_s13 = sphi %s601_s13, %s748_s13   ;;  %s563_s12 = sphi %s599_s12, %s747_s12   ;;  %s559_s11 = sphi %s597_s11, %s746_s11   ;;  %s555_s10 = sphi %s595_s10, %s745_s10   ;;  %s551_s9 = sphi %s593_s9, %s744_s9  }
   0x7   : > { %s30_s17 = sadd.s32 1, %s567_s13  ;;  %s39_s18 = sadd.s32 1, %s559_s11 }
   0x8   : > { %p32_p0 = scmp.ge.s32.totalorder %s30_s17, 2  ;;  %p46_p1 = scmp.ne.s32.totalorder %s559_s11, %s555_s10 }
   0x9   : > { %p47_p2 = scmp.eq.s32.totalorder %s571_s14, 0  ;;  %p52_p3 = scmp.ne.s32.totalorder %s555_s10, %s551_s9 }
   0xa   : > { %s750_s17 = smov (%p32_p0, %s30_s17), 0  ;;  %p53_p5 = scmp.eq.s32.totalorder %s367_s15, 0 }
   0xb   : > { %p634_p4 = por %p47_p2, %p46_p1  ;;  %s34_s20 = ssub.s32 %s567_s13, %s750_s17 }
   0xc   : > { %p99_p6 = scmp.eq.s32.totalorder %s367_s15, 1  ;;  %p37_p7 = scmp.eq.s32.totalorder %s34_s20, 0 }
   0xd   : > { %p640_p8 = por %p53_p5, %p52_p3  ;;  %p105_p10 = scmp.eq.s32.totalorder %s368_s16, 1 }
   0xe   : > { %p644_p9 = por %p99_p6, %p46_p1  ;;  %p370_p12 = scmp.ge.s32.totalorder %s571_s14, 2 }
   0xf   : > { %s649_s23 = scalar_select %p37_p7, %s559_s11, %s39_s18  }
  0x10   : > { %p651_p11 = por %p105_p10, %p52_p3  ;;  %p396_p13 = scmp.lt.s32.totalorder %s571_s14, 2 }
  0x11   : > { %s128_s25 = sand.u32 1, %s559_s11   ;;  %s382_s27 = sshll.u32 %s567_s13, 3 }
  0x12   : > { %s371_s26 = sshll.u32 %s128_s25, 3  ;;  %s138_s30 = scalar_lea.hbm %s737_s0, %s382_s27 }
  0x13   : > { %s132_s3 = scalar_lea.vmem [#allocation2], %s371_s26  ;;  %s139_s5 = sshll.u32 %s138_s30, 4  ;;  %s140_s5 = int_to_ptr.hbm [resolvable:$true] %s139_s5 }
  0x14   : > { %s141_s4 = sshll.u32 %s132_s3, 4  ;;  %p389_p0 = pnand %p396_p13, %p634_p4  ;;  %s142_s4 = int_to_ptr.vmem [resolvable:$true] %s141_s4 }
  0x15   : > { %p374_p1 = scmp.ge.s32.totalorder %s571_s14, 1  ;;  %s129_s6 = scalar_lea.sflag [#allocation3], %s128_s25 }
  0x16   : > { %s573_s7 = smov 32   ;;  %s574_s8 = smov 2  }
  0x17   : > { %391 = dma.hbm_to_vmem [thread:$0]  (!%p389_p0), %s140_s5, 128, %s142_s4, %s129_s6, %s573_s7, %s573_s7, %s574_s8  }
  0x18   : > { %p149_p2 = scmp.lt.s32.totalorder %s571_s14, 3 }
  0x1a   : > { %p150_p3 = pnand %p374_p1, %p149_p2 }
  0x1b   : > { %s667_s15 = sand.u32 (!%p150_p3), 1, %s555_s10  }
  0x1c   : > { %153 = sbr.rel (%p150_p3) target bundleno = 166 (0xa6), region = 28  ;;  %s375_s16 = sshll.u32 (!%p150_p3), %s667_s15, 3 }
  0x1d   : > { %s156_s18 = scalar_lea.sflag (!%p150_p3), [#allocation3], %s667_s15  ;;  %s159_s19 = scalar_lea.vmem (!%p150_p3), [#allocation2], %s375_s16 }
  0x21   : > { %542 = dma.done.wait (%p640_p8), %s156_s18, 128  }
  0x22   : > { %544 = vsyncadd (%p640_p8), %s156_s18, 4294967168  ;;  %v575_v0 = vmov 0   ;;  %v453_v1 = vld [vmem:[%s738_s1 + $0x2] ss:$0 sm:$0xff]  ;;  %v454_v2 = vld [vmem:[%s738_s1] ss:$0 sm:$0xff] }
  0x23   : > { %452 = vset.pattern.permute.xlu1 %v575_v0  ;;  %451 = vset.pattern.permute.xlu0 %v575_v0  ;;  %v455_v3 = vld [vmem:[%s738_s1 + $0x3] ss:$0 sm:$0xff]  ;;  %v456_v4 = vld [vmem:[%s738_s1 + $0x1] ss:$0 sm:$0xff]  ;;  %vm185_vm0 = vcmask 1041408   ;;  %s383_s3 = sshll.u32 %s563_s12, 3 }
  0x24   : > { %250 = vperm.xlu1 %452, %v453_v1   ;;  %242 = vperm.xlu0 %451, %v454_v2   ;;  %v181_v5 = vld [vmem:[%s159_s19] sm:$0x3]  ;;  %v182_v6 = vld [vmem:[%s159_s19 + $0x2] sm:$0x3]  ;;  %v183_v11 = vld [vmem:[%s159_s19 + $0x4] sm:$0x3]  ;;  %s278_s7 = scalar_lea.hbm %s739_s2, %s383_s3 }
  0x25   : > { %v186_v7 = vsel %vm185_vm0, %v181_v5, 0.0  ;;  %v187_v8 = vsel %vm185_vm0, %v182_v6, 0.0  ;;  %v194_v9 = vmul.f32 %v181_v5, %v181_v5  ;;  %v195_v10 = vmul.f32 %v182_v6, %v182_v6  ;;  %v184_v17 = vld [vmem:[%s159_s19 + $0x6] sm:$0x3]  ;;  %s180_s4 = scalar_lea.vmem [#allocation5], %s375_s16  ;;  %s281_s18 = sshll.u32 %s278_s7, 4  ;;  %s282_s18 = int_to_ptr.hbm [resolvable:$true] %s281_s18 }
  0x26   : > { %v188_v12 = vadd.f32 %v187_v8, %v186_v7  ;;  %v189_v13 = vsel %vm185_vm0, %v183_v11, 0.0  ;;  %v196_v14 = vmul.f32 %v183_v11, %v183_v11  ;;  %v191_v20 = vsel %vm185_vm0, %v184_v17, 0.0  ;;  %s279_s8 = sshll.u32 %s180_s4, 4  ;;  %s266_s12 = scalar_lea.sflag [#allocation4], %s667_s15  ;;  %s280_s8 = int_to_ptr.vmem [resolvable:$true] %s279_s8 }
  0x27   : > { %v198_v15 = vsel %vm185_vm0, %v194_v9, 0.0  ;;  %v199_v16 = vsel %vm185_vm0, %v195_v10, 0.0  ;;  %v197_v21 = vmul.f32 %v184_v17, %v184_v17  ;;  %s503_s16 = sshra.s32 %s282_s18, 4  ;;  %s509_s26 = scalar_lea.hbm %s739_s2, 16  ;;  %s504_s16 = int_to_ptr.hbm [resolvable:$true] %s503_s16 }
  0x28   : > { %v190_v18 = vadd.f32 %v189_v13, %v188_v12  ;;  %v200_v19 = vadd.f32 %v199_v16, %v198_v15  ;;  %v201_v22 = vsel %vm185_vm0, %v196_v14, 0.0  ;;  %s505_s19 = scalar_lea.hbm %s504_s16, 8  ;;  %p510_p7 = scmp.lt.s32.totalorder %s504_s16, %s739_s2 }
  0x29   : > { %v203_v25 = vsel %vm185_vm0, %v197_v21, 0.0  ;;  %p506_p4 = scmp.ne.s32.totalorder %s504_s16, %s505_s19  ;;  %p511_p8 = scmp.lt.s32.totalorder %s509_s26, %s505_s19 }
  0x2a   : > { %v192_v23 = vadd.f32 %v191_v20, %v190_v18  ;;  %v202_v24 = vadd.f32 %v201_v22, %v200_v19 }
  0x2b   : > { %p507_p5 = pnand %p506_p4, %p644_p9  ;;  %p512_p10 = por %p511_p8, %p510_p7 }
  0x2c   : > { %254 = vperm.xlu1 %452, %v455_v3   ;;  %246 = vperm.xlu0 %451, %v456_v4   ;;  %v193_v26 = vmul.f32 0.25, %v192_v23  ;;  %v204_v27 = vadd.f32 %v203_v25, %v202_v24 }
  0x2d   : > { %p508_p6 = pneg %p507_p5 }
  0x2e   : > { %v205_v28 = vmul.f32 0.25, %v204_v27  ;;  %v206_v29 = vmul.f32 %v193_v26, %v193_v26  ;;  %v219_v38 = vsub.f32 0.0, %v193_v26 }
  0x2f   : > { %p513_p13 = pnand %p512_p10, %p508_p6 }
  0x30   : > { %v207_v30 = vsub.f32 %v205_v28, %v206_v29 }
  0x32   : > { %v208_v31 = vadd.f32 1e-05, %v207_v30 }
  0x34   : > { %457 = vrsqrt.f32 %v208_v31  ;;  %vm215_vm1 = vweird.f32 %v208_v31 }
  0x3a   : > { %v458_v32 = vpop.eup %457 }
  0x3b   : > { %v210_v33 = vmul.f32 %v458_v32, %v208_v31  ;;  %vm216_vm2 = vweird.f32 %v458_v32 }
  0x3c   : > { %vm217_vm3 = vmor %vm215_vm1, %vm216_vm2 }
  0x3d   : > { %v211_v34 = vmul.f32 %v458_v32, %v210_v33 }
  0x3f   : > { %v212_v35 = vmul.f32 0.5, %v211_v34 }
  0x41   : > { %v213_v36 = vsub.f32 1.5, %v212_v35 }
  0x43   : > { %v214_v37 = vmul.f32 %v458_v32, %v213_v36 }
  0x45   : > { %v218_v39 = vsel %vm217_vm3, %v458_v32, %v214_v37 }
  0x46   : > { %v220_v40 = vmul.f32 %v219_v38, %v218_v39  ;;  %v223_v41 = vmul.f32 %v218_v39, %v183_v11  ;;  %v221_v42 = vmul.f32 %v218_v39, %v181_v5  ;;  %v224_v48 = vmul.f32 %v218_v39, %v184_v17 }
  0x47   : > { %v222_v50 = vmul.f32 %v218_v39, %v182_v6 }
  0x48   : > { %v227_v43 = vadd.f32 %v223_v41, %v220_v40  ;;  %v225_v44 = vadd.f32 %v221_v42, %v220_v40  ;;  %v228_v51 = vadd.f32 %v224_v48, %v220_v40 }
  0x49   : > { %v226_v52 = vadd.f32 %v222_v50, %v220_v40 }
  0x96   : > { %v251_v45 = vpop.permute.xlu1 %250  ;;  %v243_v47 = vpop.permute.xlu0 %242 }
  0x97   : > { %v259_v46 = vmul.f32 %v251_v45, %v227_v43  ;;  %v257_v49 = vmul.f32 %v243_v47, %v225_v44 }
  0x99   : > { %263 = vst [vmem:[%s180_s4 + $0x4] sm:$0x3] %v259_v46 }
  0x9a   : > { %261 = vst [vmem:[%s180_s4] sm:$0x3] %v257_v49 }
  0x9e   : > { %v255_v53 = vpop.permute.xlu1 %254  ;;  %v247_v55 = vpop.permute.xlu0 %246 }
  0x9f   : > { %v260_v54 = vmul.f32 %v255_v53, %v228_v51  ;;  %v258_v56 = vmul.f32 %v247_v55, %v226_v52 }
  0xa1   : > { %264 = vst [vmem:[%s180_s4 + $0x6] sm:$0x3] %v260_v54 }
  0xa2   : > { %262 = vst [vmem:[%s180_s4 + $0x2] sm:$0x3] %v258_v56 }
  0xa3   : > { %516 = shalt.err (!%p513_p13)
}
  0xa4   : > { %s576_s15 = smov 32   ;;  %s577_s29 = smov 2  }
  0xa5   : > { %386 = dma.vmem_to_hbm [thread:$0]  (%p644_p9), %s280_s8, 128, %s282_s18, %s266_s12, %s576_s15, %s576_s15, %s577_s29  }
  0xa6 PF: > { %s296_s30 = sand.u32 1, %s551_s9   ;;  %p393_p0 = pnand %p370_p12, %p651_p11 }
  0xa7   : > { %s297_s21 = scalar_lea.sflag [#allocation4], %s296_s30 }
  0xa8   : > { %p394_p1 = pneg %p393_p0 }
  0xaa   : > { %546 = dma.done.wait (%p394_p1), %s297_s21, 128  }
  0xab   : > { %548 = vsyncadd (%p394_p1), %s297_s21, 4294967168  ;;  %s18_s14 = sadd.s32 1, %s571_s14   ;;  %s744_s9 = smov %s555_s10 }
  0xac   : > { %p15_p2 = scmp.ge.s32.totalorder %s18_s14, 4   ;;  %s745_s10 = smov %s559_s11 }
  0xad   : > { %s746_s11 = smov %s649_s23  ;;  %s747_s12 = smov %s567_s13 }
  0xae   : > { %s748_s13 = smov %s750_s17  ;;  %17 = sbr.rel (!%p15_p2) target bundleno = 6 (0x6), region = 73 }
  0xb3   :  { %303 = vsyncpa [#allocation3], 1 }
  0xb4   :  { %305 = vsyncpa [#allocation3 + $0x1], 1 }
  0xb5   :  { %306 = vsyncpa [#allocation4], 1 }
  0xb6   :  { %308 = vsyncpa [#allocation4 + $0x1], 1 }

</bundles_post_ra>
